<compile_context>
chip_gen: v6e
topology: v6e:2x2x1
jax: 0.10.0
libtpu: 0.0.40
codegen_flags: <defaults>
</compile_context>

<pallas_src>
import functools

import jax
import jax.numpy as jnp
from jax.experimental import pallas as pl
from jax.experimental.pallas import tpu as pltpu


def _se_kernel(x_ref, w1_ref, w2_ref, o_ref):
    # x_ref block: (TB, C, HW) in the input's native dtype.
    x = x_ref[...]

    # --- squeeze: global average pool over spatial, f32 accumulation only
    #     (the big x block itself is never materialized in f32). ---
    pooled = jnp.mean(x, axis=-1, dtype=jnp.float32)              # (TB, C)

    # --- excitation: fc1 -> relu -> fc2 -> sigmoid, batched over TB rows so
    #     the MXU sees a (TB, C) matmul instead of M=1 every step. ---
    h = jnp.dot(pooled, w1_ref[...], preferred_element_type=jnp.float32)
    h = jnp.maximum(h, 0.0)                                       # (TB, C//r)
    s = jnp.dot(h, w2_ref[...], preferred_element_type=jnp.float32)
    s = jax.nn.sigmoid(s)                                         # (TB, C)

    # --- scale: cast the gate down once, multiply in the input dtype. ---
    o_ref[...] = x * s.astype(x.dtype)[:, :, None]


def _choose_batch_tile(b, c, hw, itemsize, vmem_block_budget=32 << 20):
    """Largest batch tile TB such that:
      (i)  2x(in block) + 2x(out block), double-buffered, fit the VMEM budget
           (budget chosen to be safe for v7x's 64 MiB VMEM),
      (ii) at least 2 grid steps remain so the 'parallel' batch axis can shard
           across the 2 TensorCores of a v7x chip,
      (iii) TB divides B (every block is full)."""
    per_batch = c * hw * itemsize
    tb = max(1, vmem_block_budget // (4 * per_batch))
    if b >= 2:
        tb = min(tb, b // 2)
    tb = min(tb, b)
    while b % tb:
        tb -= 1
    return int(tb)


@functools.partial(jax.jit, donate_argnums=0)
def se_attention(x, w1, w2):
    """SEAttention forward.

    x:  (B, C, H, W)
    w1: (C//r, C)   -- PyTorch nn.Linear layout (out_features, in_features)
    w2: (C, C//r)
    x is donated: the output aliases x's HBM buffer (in-place scaling).
    """
    b, c, h, w = x.shape
    hw = h * w
    hidden = w1.shape[0]

    # Keep the NC(HW) layout: C < 128 for the demo shape and the input arrives
    # NCHW, so an NHWC relayout would cost a full extra HBM pass.
    # TODO(synk): for production shapes with C >= 128, switch to (B, HW, C)
    # blocks (sublane mean, lane-dense output, no XLU relayout of the gate).
    x_flat = x.reshape(b, c, hw)
    w1_t = jnp.transpose(w1)          # (C, C//r)
    w2_t = jnp.transpose(w2)          # (C//r, C)

    tb = _choose_batch_tile(b, c, hw, x.dtype.itemsize)
    # TODO(synk): if a single (C, HW) slab already exceeds the VMEM budget
    # (very large C*HW, esp. on v7x), fall back to a two-pass structure:
    # pool over HW tiles first, then a tiled elementwise scale pass.

    block_bytes = tb * c * hw * x.dtype.itemsize
    weight_bytes = (w1.size + w2.size) * w1.dtype.itemsize
    # 2x double-buffered input blocks + 2x output blocks + double-buffered
    # weights + headroom; clamp to a range that is safe on all chips.
    vmem_limit = int(4 * block_bytes + 4 * weight_bytes + (2 << 20))
    vmem_limit = max(min(vmem_limit, 48 << 20), 16 << 20)

    out_flat = pl.pallas_call(
        _se_kernel,
        out_shape=jax.ShapeDtypeStruct((b, c, hw), x.dtype),
        grid_spec=pltpu.PrefetchScalarGridSpec(
            num_scalar_prefetch=0,
            grid=(b // tb,),
            in_specs=[
                pl.BlockSpec((tb, c, hw), lambda i: (i, 0, 0)),
                pl.BlockSpec((c, hidden), lambda i: (0, 0)),
                pl.BlockSpec((hidden, c), lambda i: (0, 0)),
            ],
            out_specs=pl.BlockSpec((tb, c, hw), lambda i: (i, 0, 0)),
        ),
        compiler_params=pltpu.CompilerParams(
            dimension_semantics=("parallel",),
            vmem_limit_bytes=vmem_limit,
        ),
        # SE scaling is naturally in-place: output reuses x's HBM buffer.
        input_output_aliases={0: 0},
    )(x_flat, w1_t, w2_t)

    return out_flat.reshape(b, c, h, w)


def se_attention_ref(x, w1, w2):
    """Pure-JAX reference matching the PyTorch forward."""
    y = jnp.mean(x, axis=(2, 3))                      # (B, C)
    y = jnp.maximum(y @ w1.T, 0.0)                    # (B, C//r)
    y = jax.nn.sigmoid(y @ w2.T)                      # (B, C)
    return x * y[:, :, None, None]


if __name__ == "__main__":
    # Small shapes consistent with the module: channel=64, reduction=16.
    B, C, H, W = 2, 64, 16, 16
    reduction = 16
    hidden = C // reduction

    key = jax.random.PRNGKey(0)
    kx, k1, k2 = jax.random.split(key, 3)

    x = jax.random.normal(kx, (B, C, H, W), dtype=jnp.float32)
    # Deterministic Linear weights (std=0.001, no bias, like init_weights()).
    w1 = 0.001 * jax.random.normal(k1, (hidden, C), dtype=jnp.float32)  # fc1: C -> C//r
    w2 = 0.001 * jax.random.normal(k2, (C, hidden), dtype=jnp.float32)  # fc2: C//r -> C

    # Compute the reference BEFORE the kernel call: x is donated (aliased
    # in-place) by se_attention and must not be read afterwards.
    ref = jax.block_until_ready(se_attention_ref(x, w1, w2))

    out = se_attention(x, w1, w2)
    out = jax.block_until_ready(out)

    assert out.shape == (B, C, H, W)
    assert out.dtype == ref.dtype
    assert jnp.allclose(out, ref, atol=1e-5, rtol=1e-5), "mismatch vs reference"

    print("KERNEL_OK")
</pallas_src>

<mosaic_0001>
module attributes {stable_mosaic.version = 11 : i64} {
  func.func @_se_kernel(%arg0: i32, %arg1: memref<1x64x256xf32, #tpu.memory_space<vmem>>, %arg2: memref<64x4xf32, #tpu.memory_space<vmem>>, %arg3: memref<4x64xf32, #tpu.memory_space<vmem>>, %arg4: memref<1x64x256xf32, #tpu.memory_space<vmem>>) attributes {dimension_semantics = [#tpu.dimension_semantics<parallel>], iteration_bounds = array<i64: 2>, scalar_prefetch = 0 : i64, scratch_operands = 0 : i64, tpu.core_type = #tpu.core_type<tc>, window_params = [{transform_indices = @transform_0, window_bounds = array<i64: 1, 64, 256>}, {pipeline_mode = #tpu.pipeline_mode<synchronous>, transform_indices = @transform_1, window_bounds = array<i64: 64, 4>}, {pipeline_mode = #tpu.pipeline_mode<synchronous>, transform_indices = @transform_2, window_bounds = array<i64: 4, 64>}, {transform_indices = @transform_3, window_bounds = array<i64: 1, 64, 256>}]} {
    %c0 = arith.constant 0 : index
    %c0_0 = arith.constant 0 : index
    %c0_1 = arith.constant 0 : index
    %0 = vector.load %arg1[%c0, %c0_0, %c0_1] : memref<1x64x256xf32, #tpu.memory_space<vmem>>, vector<1x64x256xf32>
    %cst = arith.constant dense<0.000000e+00> : vector<1x64xf32>
    %1 = vector.multi_reduction <add>, %0, %cst [2] : vector<1x64x256xf32> to vector<1x64xf32>
    %cst_2 = arith.constant 2.560000e+02 : f32
    %2 = vector.broadcast %cst_2 : f32 to vector<1x64xf32>
    %3 = arith.divf %1, %2 : vector<1x64xf32>
    %c0_3 = arith.constant 0 : index
    %c0_4 = arith.constant 0 : index
    %4 = vector.load %arg2[%c0_3, %c0_4] : memref<64x4xf32, #tpu.memory_space<vmem>>, vector<64x4xf32>
    %cst_5 = arith.constant dense<0.000000e+00> : vector<1x4xf32>
    %5 = tpu.matmul %3, %4, %cst_5 {dimension_numbers = #tpu.dot_dimension_numbers<[1], [0], [0], [1], [0, 0, 1, 1], [], []>} : vector<1x64xf32>, vector<64x4xf32>, vector<1x4xf32> -> vector<1x4xf32>
    %cst_6 = arith.constant 0.000000e+00 : f32
    %6 = vector.broadcast %cst_6 : f32 to vector<1x4xf32>
    %7 = arith.maximumf %5, %6 : vector<1x4xf32>
    %c0_7 = arith.constant 0 : index
    %c0_8 = arith.constant 0 : index
    %8 = vector.load %arg3[%c0_7, %c0_8] : memref<4x64xf32, #tpu.memory_space<vmem>>, vector<4x64xf32>
    %cst_9 = arith.constant dense<0.000000e+00> : vector<1x64xf32>
    %9 = tpu.matmul %7, %8, %cst_9 {dimension_numbers = #tpu.dot_dimension_numbers<[1], [0], [0], [1], [0, 0, 1, 1], [], []>} : vector<1x4xf32>, vector<4x64xf32>, vector<1x64xf32> -> vector<1x64xf32>
    %10 = arith.negf %9 : vector<1x64xf32>
    %11 = math.exp %10 : vector<1x64xf32>
    %cst_10 = arith.constant 1.000000e+00 : f32
    %12 = vector.broadcast %cst_10 : f32 to vector<1x64xf32>
    %13 = arith.addf %12, %11 : vector<1x64xf32>
    %14 = arith.divf %12, %13 : vector<1x64xf32>
    %15 = vector.shape_cast %14 : vector<1x64xf32> to vector<1x64x1xf32>
    %16 = vector.broadcast %15 : vector<1x64x1xf32> to vector<1x64x256xf32>
    %17 = arith.mulf %0, %16 : vector<1x64x256xf32>
    %c0_11 = arith.constant 0 : index
    %c0_12 = arith.constant 0 : index
    %c0_13 = arith.constant 0 : index
    %18 = vector.load %arg4[%c0_11, %c0_12, %c0_13] : memref<1x64x256xf32, #tpu.memory_space<vmem>>, vector<1x64x256xf32>
    tpu.vector_store %arg4[%c0_11, %c0_12, %c0_13], %17 {strides = array<i32>} : memref<1x64x256xf32, #tpu.memory_space<vmem>>, vector<1x64x256xf32>,
    return
  }
  func.func @transform_0(%arg0: i32) -> (i32, i32, i32) {
    %c0_i32 = arith.constant 0 : i32
    %c0_i32_0 = arith.constant 0 : i32
    %c0_i32_1 = arith.constant 0 : i32
    return %arg0, %c0_i32, %c0_i32_0 : i32, i32, i32
  }
  func.func @transform_1(%arg0: i32) -> (i32, i32) {
    %c0_i32 = arith.constant 0 : i32
    %c0_i32_0 = arith.constant 0 : i32
    %c0_i32_1 = arith.constant 0 : i32
    return %c0_i32, %c0_i32_0 : i32, i32
  }
  func.func @transform_2(%arg0: i32) -> (i32, i32) {
    %c0_i32 = arith.constant 0 : i32
    %c0_i32_0 = arith.constant 0 : i32
    %c0_i32_1 = arith.constant 0 : i32
    return %c0_i32, %c0_i32_0 : i32, i32
  }
  func.func @transform_3(%arg0: i32) -> (i32, i32, i32) {
    %c0_i32 = arith.constant 0 : i32
    %c0_i32_0 = arith.constant 0 : i32
    %c0_i32_1 = arith.constant 0 : i32
    return %arg0, %c0_i32, %c0_i32_0 : i32, i32, i32
  }
}

</mosaic_0001>

<bundles_post_ra>
// kernel: se_attention.1
= control target key start
LH: loop header
LB: loop body
LE: loop exit
PB: predicated region body
PF: predicated region fallthrough
CT: control target
= control target key end

     0   :  { %s668_s12 = smov 0   ;;  %s813_s0 = inlined_call_operand.vmem [shape: f32[2,64,256], index: 0, kind: input, shape index: {}, may-alias: {0,3}]   ;;  %s814_s1 = inlined_call_operand.vmem [shape: f32[64,4], index: 1, kind: input, shape index: {}]   ;;  %s815_s2 = inlined_call_operand.vmem [shape: f32[4,64], index: 2, kind: input, shape index: {}]   ;;  %s816_s3 = inlined_call_operand.vmem [shape: f32[2,64,256], index: 3, kind: output, shape index: {}, may-alias: {0,3}]  }
   0x1 LB: > { %s572_s13 = sadd.s32 4294967295, %s644_s12   ;;  %p576_p0 = scmp.ge.s32.totalorder %s644_s12, 1  ;;  %s644_s12 = sphi %s668_s12, %s13_s12  }
   0x2   : > { %p137_p1 = scmp.lt.s32.totalorder %s644_s12, 3 }
   0x4   : > { %p138_p2 = pnand %p576_p0, %p137_p1 }
   0x5   : > { %p161_p3 = scmp.lt.s32.totalorder (!%p138_p2), %s572_s13, 1 }
   0x6   : > { %141 = sbr.rel (%p138_p2) target bundleno = 729 (0x2d9), region = 32 }
   0xb   : > { %s818_s13 = smov (!%p161_p3, %s572_s13), 1  ;;  %v646_v24 = vmov 0.0   ;;  %v227_v25 = vld [vmem:[%s814_s1 + $0x38] sm:$0xff]  ;;  %v226_v26 = vld [vmem:[%s814_s1 + $0x30] sm:$0xff]  ;;  %v225_v27 = vld [vmem:[%s814_s1 + $0x28] sm:$0xff]  ;;  %vm647_vm0 = vmmov 0   ;;  %v236_v33 = vlaneseq }
   0xc   : > { %s587_s14 = sshll.u32 %s818_s13, 7  ;;  %600 = vmatprep.subr.mxu0 %v646_v24  ;;  %619 = vmatprep.subr.mxu1 %v646_v24  ;;  %v224_v28 = vld [vmem:[%s814_s1 + $0x20] sm:$0xff]  ;;  %v223_v29 = vld [vmem:[%s814_s1 + $0x18] sm:$0xff]  ;;  %v222_v30 = vld [vmem:[%s814_s1 + $0x10] sm:$0xff]  ;;  %vm247_vm1 = vcmask 130112   ;;  %vm254_vm2 = vcmask 195712  }
   0xd   : > { %s165_s17 = scalar_lea.vmem %s813_s0, %s587_s14  ;;  %601 = vmatpush3.msra.mxu0 %v227_v25  ;;  %v221_v31 = vld [vmem:[%s814_s1 + $0x8] sm:$0xff]  ;;  %v220_v32 = vld [vmem:[%s814_s1] sm:$0xff]  ;;  %616 = vmatprep.mubr.msk.f32.mxu0 %vm647_vm0, %v646_v24  ;;  %v237_v34 = vand.u32 127, %v236_v33  ;;  %v756_v35 = vshrl.u32 %v236_v33, 7  ;;  %vm261_vm3 = vcmask 261312   ;;  %vm268_vm4 = vcmask 326912   ;;  %s776_s11 = scalar_lea.vmem %s816_s3, %s587_s14 }
   0xe   : > { %v684_v0 = vld [vmem:[%s165_s17] sm:$0xff]  ;;  %v686_v1 = vld [vmem:[%s165_s17 + $0x8] sm:$0xff]  ;;  %v694_v5 = vld [vmem:[%s165_s17 + $0x10] sm:$0xff]  ;;  %602 = vmatprep.subr.mxu0 %v646_v24  ;;  %621 = vmatprep.mubr.msk.f32.mxu1 %vm647_vm0, %v646_v24  ;;  %vm275_vm5 = vcmask 392512   ;;  %vm282_vm6 = vcmask 458112   ;;  %vm289_vm7 = vcmask 523712  }
   0xf   : > { %v688_v2 = vld [vmem:[%s165_s17 + $0x20] sm:$0xff]  ;;  %v187_v3 = vadd.f32 %v686_v1, %v684_v0  ;;  %v692_v4 = vld [vmem:[%s165_s17 + $0x28] sm:$0xff]  ;;  %v696_v6 = vld [vmem:[%s165_s17 + $0x18] sm:$0xff]  ;;  %603 = vmatpush3.msra.mxu0 %v226_v26  ;;  %v242_v36 = vadd.s32 4294967288, %v237_v34  ;;  %v249_v38 = vadd.s32 4294967280, %v237_v34  ;;  %v256_v39 = vadd.s32 4294967272, %v237_v34 }
  0x10   : > { %v193_v7 = vadd.f32 %v692_v4, %v688_v2  ;;  %v700_v8 = vld [vmem:[%s165_s17 + $0x30] sm:$0xff]  ;;  %v702_v9 = vld [vmem:[%s165_s17 + $0x38] sm:$0xff]  ;;  %v190_v10 = vadd.f32 %v696_v6, %v694_v5  ;;  %v708_v12 = vld [vmem:[%s165_s17 + $0x40] sm:$0xff]  ;;  %604 = vmatprep.subr.mxu0 %v646_v24  ;;  %v240_v41 = vsub.s32 %v237_v34, %v756_v35  ;;  %v263_v44 = vadd.s32 4294967264, %v237_v34 }
  0x11   : > { %188 = vadd.xlane.f32.xlu0 %v187_v3  ;;  %v196_v11 = vadd.f32 %v702_v9, %v700_v8  ;;  %v710_v13 = vld [vmem:[%s165_s17 + $0x48] sm:$0xff]  ;;  %v712_v14 = vld [vmem:[%s165_s17 + $0x50] sm:$0xff]  ;;  %v714_v15 = vld [vmem:[%s165_s17 + $0x58] sm:$0xff]  ;;  %605 = vmatpush3.msra.mxu0 %v225_v27  ;;  %v245_v43 = vsub.s32 %v242_v36, %v756_v35  ;;  %v252_v45 = vsub.s32 %v249_v38, %v756_v35  ;;  %v270_v49 = vadd.s32 4294967256, %v237_v34 }
  0x12   : > { %194 = vadd.xlane.f32.xlu1 %v193_v7  ;;  %v199_v16 = vadd.f32 %v710_v13, %v708_v12  ;;  %v202_v17 = vadd.f32 %v714_v15, %v712_v14  ;;  %v720_v18 = vld [vmem:[%s165_s17 + $0x60] sm:$0xff]  ;;  %v722_v19 = vld [vmem:[%s165_s17 + $0x68] sm:$0xff]  ;;  %v724_v20 = vld [vmem:[%s165_s17 + $0x70] sm:$0xff]  ;;  %606 = vmatprep.subr.mxu0 %v646_v24  ;;  %v259_v48 = vsub.s32 %v256_v39, %v756_v35  ;;  %v277_v56 = vadd.s32 4294967248, %v237_v34 }
  0x13   : > { %v726_v21 = vld [vmem:[%s165_s17 + $0x78] sm:$0xff]  ;;  %v205_v22 = vadd.f32 %v722_v19, %v720_v18  ;;  %607 = vmatpush3.msra.mxu0 %v224_v28  ;;  %v266_v55 = vsub.s32 %v263_v44, %v756_v35  ;;  %v273_v60 = vsub.s32 %v270_v49, %v756_v35  ;;  %v284_v61 = vadd.s32 4294967240, %v237_v34  ;;  %v365_v34 = vld [vmem:[%s815_s2] sm:$0xf] }
  0x14   : > { %v208_v23 = vadd.f32 %v726_v21, %v724_v20  ;;  %608 = vmatprep.subr.mxu0 %v646_v24  ;;  %vm291_vm8 = vcmask 523264   ;;  %vm370_vm9 = vcmask 1043456   ;;  %vm366_vm10 = vcmask 31744  }
  0x15   : > { %191 = vadd.xlane.f32.xlu0 %v190_v10  ;;  %609 = vmatpush3.msra.mxu0 %v223_v29  ;;  %v452_v44 = vsub.s32 0, %v756_v35 }
  0x16   : > { %197 = vadd.xlane.f32.xlu1 %v196_v11  ;;  %610 = vmatprep.subr.mxu0 %v646_v24 }
  0x17   : > { %611 = vmatpush3.msra.mxu0 %v222_v30  ;;  %620 = vmatpush3.msk.msra.mxu1 %vm370_vm9, %v365_v34 }
  0x18   : > { %612 = vmatprep.subr.mxu0 %v646_v24 }
  0x19   : > { %200 = vadd.xlane.f32.xlu0 %v199_v16  ;;  %613 = vmatpush3.msra.mxu0 %v221_v31 }
  0x1a   : > { %203 = vadd.xlane.f32.xlu1 %v202_v17  ;;  %614 = vmatprep.subr.mxu0 %v646_v24  ;;  %v280_v17 = vsub.s32 %v277_v56, %v756_v35  ;;  %v287_v24 = vsub.s32 %v284_v61, %v756_v35 }
  0x1b   : > { %615 = vmatpush3.msra.mxu0 %v220_v32 }
  0x1d   : > { %206 = vadd.xlane.f32.xlu0 %v205_v22 }
  0x1e   : > { %209 = vadd.xlane.f32.xlu1 %v208_v23 }
  0x9a   : > { %v189_v37 = vpop.xlane.xlu0 %188 }
  0x9b   : > { %v195_v40 = vpop.xlane.xlu1 %194  ;;  %v212_v42 = vmul.f32 0.00390625, %v189_v37 }
  0x9c   : > { %v214_v46 = vmul.f32 0.00390625, %v195_v40 }
  0x9d   : > { %v241_v53 = vrot.slane %v212_v42, %v240_v41 }
  0x9e   : > { %v192_v47 = vpop.xlane.xlu0 %191  ;;  %v253_v57 = vrot.slane %v214_v46, %v252_v45 }
  0x9f   : > { %v213_v50 = vmul.f32 0.00390625, %v192_v47  ;;  %v198_v51 = vpop.xlane.xlu1 %197 }
  0xa0   : > { %v215_v52 = vmul.f32 0.00390625, %v198_v51 }
  0xa1   : > { %v246_v54 = vrot.slane %v213_v50, %v245_v43 }
  0xa2   : > { %v260_v58 = vrot.slane %v215_v52, %v259_v48  ;;  %v201_v59 = vpop.xlane.xlu0 %200 }
  0xa3   : > { %v248_v62 = vsel %vm247_vm1, %v246_v54, %v241_v53  ;;  %v216_v63 = vmul.f32 0.00390625, %v201_v59  ;;  %v204_v3 = vpop.xlane.xlu1 %203 }
  0xa4   : > { %v255_v7 = vsel %vm254_vm2, %v253_v57, %v248_v62  ;;  %v217_v10 = vmul.f32 0.00390625, %v204_v3 }
  0xa5   : > { %v262_v11 = vsel %vm261_vm3, %v260_v58, %v255_v7  ;;  %v267_v16 = vrot.slane %v216_v63, %v266_v55 }
  0xa6   : > { %v274_v22 = vrot.slane %v217_v10, %v273_v60  ;;  %v207_v23 = vpop.xlane.xlu0 %206 }
  0xa7   : > { %v269_v25 = vsel %vm268_vm4, %v267_v16, %v262_v11  ;;  %v218_v26 = vmul.f32 0.00390625, %v207_v23  ;;  %v210_v27 = vpop.xlane.xlu1 %209 }
  0xa8   : > { %v219_v28 = vmul.f32 0.00390625, %v210_v27  ;;  %v276_v30 = vsel %vm275_vm5, %v274_v22, %v269_v25 }
  0xa9   : > { %v281_v29 = vrot.slane %v218_v26, %v280_v17 }
  0xaa   : > { %v288_v31 = vrot.slane %v219_v28, %v287_v24 }
  0xab   : > { %v283_v32 = vsel %vm282_vm6, %v281_v29, %v276_v30 }
  0xac   : > { %v290_v33 = vsel %vm289_vm7, %v288_v31, %v283_v32 }
  0xad   : > { %617 = vmatmul.mubr.msk.f32.vlgmr.msra.gmra.mxu0 %vm291_vm8, %v290_v33 }
 0x16d   : > { %v360_v36 = vpop.f32.mrf.mxu0 }
 0x16e   : > { %v364_v37 = vmax.f32 %v360_v36, 0.0 }
 0x16f   : > { %v618_v38 = vpop.f32.mrf.mxu0 }
 0x170   : > { %622 = vmatmul.mubr.msk.f32.vlgmr.msra.gmra.mxu1 %vm366_vm10, %v364_v37 }
 0x230   : > { %v440_v39 = vpop.f32.mrf.mxu1 }
 0x231   : > { %v584_v40 = vmul.f32 -1.442695, %v440_v39 }
 0x232   : > { %v623_v41 = vpop.f32.mrf.mxu1 }
 0x233   : > { %634 = vpow2.f32 %v584_v40 }
 0x240   : > { %v635_v42 = vpop.eup %634 }
 0x241   : > { %v447_v43 = vadd.f32 1.0, %v635_v42 }
 0x243   : > { %636 = vrcp.f32 %v447_v43 }
 0x250   : > { %v637_v45 = vpop.eup %636 }
 0x251   : > { %v453_v46 = vrot.slane %v637_v45, %v452_v44 }
 0x253   : > { %459 = vbcast.lane.b32.xlu1 %v453_v46, 264  ;;  %455 = vbcast.lane.b32.xlu0 %v453_v46, 256 }
 0x257   : > { %463 = vbcast.lane.b32.xlu1 %v453_v46, 272  ;;  %471 = vbcast.lane.b32.xlu0 %v453_v46, 288 }
 0x25b   : > { %467 = vbcast.lane.b32.xlu1 %v453_v46, 280  ;;  %479 = vbcast.lane.b32.xlu0 %v453_v46, 304 }
 0x25f   : > { %475 = vbcast.lane.b32.xlu1 %v453_v46, 296 }
 0x263   : > { %483 = vbcast.lane.b32.xlu1 %v453_v46, 312 }
 0x2c5   : > { %v460_v35 = vpop.permute.xlu1 %459  ;;  %v456_v47 = vpop.permute.xlu0 %455 }
 0x2c6   : > { %v487_v48 = vmul.f32 %v460_v35, %v694_v5  ;;  %v488_v49 = vmul.f32 %v460_v35, %v696_v6  ;;  %v485_v50 = vmul.f32 %v456_v47, %v684_v0  ;;  %v486_v51 = vmul.f32 %v456_v47, %v686_v1 }
 0x2c8   : > { %503 = vst [vmem:[%s776_s11 + $0x10] sm:$0xff] %v487_v48  ;;  %504 = vst [vmem:[%s776_s11 + $0x18] sm:$0xff] %v488_v49 }
 0x2c9   : > { %501 = vst [vmem:[%s776_s11] sm:$0xff] %v485_v50  ;;  %502 = vst [vmem:[%s776_s11 + $0x8] sm:$0xff] %v486_v51  ;;  %v464_v52 = vpop.permute.xlu1 %463  ;;  %v472_v53 = vpop.permute.xlu0 %471 }
 0x2ca   : > { %v489_v54 = vmul.f32 %v464_v52, %v688_v2  ;;  %v490_v5 = vmul.f32 %v464_v52, %v692_v4  ;;  %v493_v6 = vmul.f32 %v472_v53, %v708_v12  ;;  %v494_v0 = vmul.f32 %v472_v53, %v710_v13 }
 0x2cc   : > { %505 = vst [vmem:[%s776_s11 + $0x20] sm:$0xff] %v489_v54  ;;  %506 = vst [vmem:[%s776_s11 + $0x28] sm:$0xff] %v490_v5 }
 0x2cd   : > { %509 = vst [vmem:[%s776_s11 + $0x40] sm:$0xff] %v493_v6  ;;  %510 = vst [vmem:[%s776_s11 + $0x48] sm:$0xff] %v494_v0  ;;  %v468_v1 = vpop.permute.xlu1 %467  ;;  %v480_v55 = vpop.permute.xlu0 %479 }
 0x2ce   : > { %v491_v56 = vmul.f32 %v468_v1, %v700_v8  ;;  %v492_v2 = vmul.f32 %v468_v1, %v702_v9  ;;  %v497_v4 = vmul.f32 %v480_v55, %v720_v18  ;;  %v498_v12 = vmul.f32 %v480_v55, %v722_v19 }
 0x2d0   : > { %507 = vst [vmem:[%s776_s11 + $0x30] sm:$0xff] %v491_v56  ;;  %508 = vst [vmem:[%s776_s11 + $0x38] sm:$0xff] %v492_v2 }
 0x2d1   : > { %513 = vst [vmem:[%s776_s11 + $0x60] sm:$0xff] %v497_v4  ;;  %514 = vst [vmem:[%s776_s11 + $0x68] sm:$0xff] %v498_v12  ;;  %v476_v13 = vpop.permute.xlu1 %475 }
 0x2d2   : > { %v495_v57 = vmul.f32 %v476_v13, %v712_v14  ;;  %v496_v58 = vmul.f32 %v476_v13, %v714_v15 }
 0x2d4   : > { %511 = vst [vmem:[%s776_s11 + $0x50] sm:$0xff] %v495_v57  ;;  %512 = vst [vmem:[%s776_s11 + $0x58] sm:$0xff] %v496_v58 }
 0x2d5   : > { %v484_v8 = vpop.permute.xlu1 %483 }
 0x2d6   : > { %v499_v59 = vmul.f32 %v484_v8, %v724_v20  ;;  %v500_v9 = vmul.f32 %v484_v8, %v726_v21 }
 0x2d8   : > { %515 = vst [vmem:[%s776_s11 + $0x70] sm:$0xff] %v499_v59  ;;  %516 = vst [vmem:[%s776_s11 + $0x78] sm:$0xff] %v500_v9 }
 0x2d9 PF: > { %s13_s12 = sadd.s32 1, %s644_s12  }
 0x2da   : > { %p10_p4 = scmp.ge.s32.totalorder %s13_s12, 4  }
 0x2dc   :  { %12 = sbr.rel (!%p10_p4) target bundleno = 1 (0x1), region = 62 }

</bundles_post_ra>
